<compile_context>
chip_gen: v5e
topology: v5e:2x2
jax: 0.10.0
libtpu: 0.0.40
codegen_flags: <defaults>
</compile_context>

<pallas_src>
import functools
import math

import jax
import jax.numpy as jnp
from jax import lax
from jax.experimental import pallas as pl
from jax.experimental.pallas import tpu as pltpu

_TEMP = 30.0                      # softmax temperature used by the TrDiMP RelationUnit
_DK_PAD = 128                     # key feature dim zero-padded to a full lane width
_VMEM_LIMIT = 48 * 1024 * 1024    # safe on v5e/v6e (128 MiB) and v7x (64 MiB physical)


def _round_up(x, m):
    return ((x + m - 1) // m) * m


def _largest_tile(n, cap, multiple=16):
    """Largest divisor of n that is a multiple of `multiple` and <= cap (requires n % multiple == 0)."""
    best = multiple
    d = multiple
    top = min(n, cap)
    while d <= top:
        if n % d == 0:
            best = d
        d += multiple
    return best


def _pick_kv_group(num_imgs, hw_pad, d_pad, budget_bytes=24 * 1024 * 1024):
    """Images per kv chunk: as many as fit a conservative VMEM budget (prefer fully resident)."""
    per_img = hw_pad * (_DK_PAD * 2 + d_pad * 2) * 2 + hw_pad * hw_pad * 4
    g = 1
    for cand in range(1, num_imgs + 1):
        if num_imgs % cand == 0 and cand * per_img <= budget_bytes:
            g = cand
    return g


def _key_proj_kernel(x_ref, wk_ref, bk_ref, kn_ref):
    """Blocks: x (tm, d_pad) bf16, wk (d_pad, 128) bf16, bk (1, 128) f32, kn (tm, 128) bf16."""
    k = jnp.dot(x_ref[...], wk_ref[...], preferred_element_type=jnp.float32)   # bf16 MXU, f32 acc
    k = k + bk_ref[...]
    ss = jnp.sum(k * k, axis=-1, keepdims=True)
    # F.normalize(p=2, eps=1e-12): k / max(||k||, 1e-12) == k * rsqrt(max(||k||^2, 1e-24))
    kn_ref[...] = (k * lax.rsqrt(jnp.maximum(ss, 1e-24))).astype(kn_ref.dtype)


def _attn_norm_kernel(qkn_ref, kkn_ref, xq_ref, v_ref, out_ref, l_sc, acc_sc, *,
                      hw, hw_pad, dim, norm_scale):
    """grid = (batch, q_image, kv_chunk): fixed-max softmax attention + residual + InstanceL2Norm.

    Blocks: qkn (1, hw_pad, 128) bf16; kkn (1, tkv, 128) bf16; xq/out (1, hw_pad, d_pad) f32;
    v (1, tkv, d_pad) bf16.  Scratch: l (hw_pad, 1), acc (hw_pad, d_pad) f32 (live across kv axis).
    """
    kv = pl.program_id(2)

    @pl.when(kv == 0)
    def _():
        l_sc[...] = jnp.zeros_like(l_sc[...])
        acc_sc[...] = jnp.zeros_like(acc_sc[...])

    # Scores: contract the 128-lane (padded) key dim of both operands — no explicit transpose op.
    s = lax.dot_general(qkn_ref[0], kkn_ref[0],
                        dimension_numbers=(((1,), (1,)), ((), ())),
                        preferred_element_type=jnp.float32)            # (hw_pad, tkv)
    # q/k are L2-normalized and each query's own key is in the kv set, so max(30*q.k) == 30:
    # a fixed-max softmax is exact and needs no running-max bookkeeping.
    p = jnp.exp(_TEMP * s - _TEMP)
    if hw_pad != hw:
        # Mask padded kv rows of each image (kv chunks are whole images, so a modular mask works).
        col = lax.broadcasted_iota(jnp.int32, p.shape, 1)
        p = jnp.where((col % hw_pad) < hw, p, 0.0)
    l_sc[...] += jnp.sum(p, axis=-1, keepdims=True)
    acc_sc[...] += jnp.dot(p.astype(jnp.bfloat16), v_ref[0],
                           preferred_element_type=jnp.float32)          # bf16 MXU, f32 acc

    @pl.when(kv == pl.num_programs(2) - 1)
    def _():
        src2 = acc_sc[...] / l_sc[...]                                  # exact divide (once/q image)
        y = xq_ref[0] + src2                                            # residual, f32
        if hw_pad != hw:
            row = lax.broadcasted_iota(jnp.int32, y.shape, 0)
            y = jnp.where(row < hw, y, 0.0)                             # drop padded query rows
        # InstanceL2Norm for this (image, batch): padded dim columns are exactly zero.
        ss = jnp.sum(y * y)
        factor = (norm_scale * math.sqrt(dim * hw)) * lax.rsqrt(ss + 1e-5)
        out_ref[0] = (y * factor).astype(out_ref.dtype)                 # lane-dense full-block store


def transformer_encoder_layer(src, wk_weight, wk_bias, input_shape):
    """src: (L, B, D) with L = num_imgs*h*w (PyTorch layout).
       wk_weight: (Dk, D), wk_bias: (Dk,)  (nn.Linear(d_model, key_feature_dim))."""
    num_imgs, batch, dim, h, w = input_shape
    hw = h * w
    L = num_imgs * hw
    assert src.shape == (L, batch, dim)
    dk = wk_weight.shape[0]
    assert dk <= _DK_PAD

    hw_pad = _round_up(hw, 16)        # rows per image, sublane-friendly for bf16 and f32 blocks
    d_pad = _round_up(dim, 128)       # lane-dense value / residual / output blocks
    Lp = num_imgs * hw_pad
    norm_scale = math.sqrt(1.0 / (dim * 4 * 4))

    # Layout glue (XLA): (L, B, D) -> (B, num_imgs, hw, D), zero-pad rows and features.
    x = jnp.transpose(src.reshape(num_imgs, hw, batch, dim), (2, 0, 1, 3))
    x = jnp.pad(x, ((0, 0), (0, 0), (0, hw_pad - hw), (0, d_pad - dim)))
    x_f32 = x.reshape(batch, Lp, d_pad)                 # residual rows (f32)
    x_bf = x_f32.astype(jnp.bfloat16)                   # values / projection input (bf16, one-shot)

    # Zero-padded key projection weights (pads contribute exactly 0 to dots and norms).
    wk_pad = jnp.zeros((d_pad, _DK_PAD), jnp.bfloat16).at[:dim, :dk].set(
        wk_weight.T.astype(jnp.bfloat16))
    bk_pad = jnp.zeros((1, _DK_PAD), jnp.float32).at[0, :dk].set(wk_bias.astype(jnp.float32))

    # --- kernel 1: key projection + L2 normalization over wide row slabs ---
    rows = batch * Lp
    tm = _largest_tile(rows, 512)
    kn = pl.pallas_call(
        _key_proj_kernel,
        out_shape=jax.ShapeDtypeStruct((rows, _DK_PAD), jnp.bfloat16),
        grid_spec=pltpu.PrefetchScalarGridSpec(
            num_scalar_prefetch=0,
            grid=(rows // tm,),
            in_specs=[
                pl.BlockSpec((tm, d_pad), lambda r: (r, 0)),
                pl.BlockSpec((d_pad, _DK_PAD), lambda r: (0, 0)),
                pl.BlockSpec((1, _DK_PAD), lambda r: (0, 0)),
            ],
            out_specs=pl.BlockSpec((tm, _DK_PAD), lambda r: (r, 0)),
        ),
        compiler_params=pltpu.CompilerParams(
            dimension_semantics=("parallel",),
            vmem_limit_bytes=_VMEM_LIMIT),
    )(x_bf.reshape(rows, d_pad), wk_pad, bk_pad)
    kn = kn.reshape(batch, Lp, _DK_PAD)

    # --- kernel 2: attention (resident or image-group-tiled kv) + residual + InstanceL2Norm ---
    g = _pick_kv_group(num_imgs, hw_pad, d_pad)
    tkv = g * hw_pad
    num_kv = num_imgs // g

    kernel = functools.partial(_attn_norm_kernel, hw=hw, hw_pad=hw_pad, dim=dim,
                               norm_scale=norm_scale)
    flops = 2 * batch * Lp * Lp * (_DK_PAD + d_pad) + 4 * batch * Lp * d_pad
    bytes_accessed = (batch * Lp * d_pad * (4 + 4 + 2 * num_kv)       # residual + out + V streams
                      + batch * Lp * _DK_PAD * 2 * (1 + num_kv))      # q keys + kv keys
    cost = pl.CostEstimate(flops=flops, transcendentals=batch * Lp * Lp,
                           bytes_accessed=bytes_accessed)

    out_p = pl.pallas_call(
        kernel,
        out_shape=jax.ShapeDtypeStruct((batch, Lp, d_pad), src.dtype),
        grid_spec=pltpu.PrefetchScalarGridSpec(
            num_scalar_prefetch=0,
            grid=(batch, num_imgs, num_kv),               # (batch, q image, kv chunk)
            in_specs=[
                pl.BlockSpec((1, hw_pad, _DK_PAD), lambda b, i, j: (b, i, 0)),   # query keys
                pl.BlockSpec((1, tkv, _DK_PAD), lambda b, i, j: (b, j, 0)),      # kv keys
                pl.BlockSpec((1, hw_pad, d_pad), lambda b, i, j: (b, i, 0)),     # residual rows f32
                pl.BlockSpec((1, tkv, d_pad), lambda b, i, j: (b, j, 0)),        # values bf16
            ],
            out_specs=pl.BlockSpec((1, hw_pad, d_pad), lambda b, i, j: (b, i, 0)),
            scratch_shapes=[
                pltpu.VMEM((hw_pad, 1), jnp.float32),       # softmax denominator
                pltpu.VMEM((hw_pad, d_pad), jnp.float32),   # output accumulator
            ],
        ),
        compiler_params=pltpu.CompilerParams(
            dimension_semantics=("parallel", "parallel", "arbitrary"),
            vmem_limit_bytes=_VMEM_LIMIT),
        cost_estimate=cost,
    )(kn, kn, x_f32, x_bf)

    out = out_p.reshape(batch, num_imgs, hw_pad, d_pad)[:, :, :hw, :dim]
    return jnp.transpose(out, (1, 2, 0, 3)).reshape(L, batch, dim)   # back to (L, B, D)


def _reference(src, wk_weight, wk_bias, input_shape):
    """Pure-JAX (f32) transcription of the PyTorch forward (for verification)."""
    num_imgs, batch, dim, h, w = input_shape
    q = src @ wk_weight.T + wk_bias                                  # (L, B, Dk)
    qn = q / jnp.maximum(jnp.linalg.norm(q, axis=-1, keepdims=True), 1e-12)
    w_q = jnp.transpose(qn, (1, 0, 2))                               # (B, L, Dk)
    w_k = jnp.transpose(qn, (1, 2, 0))                               # (B, Dk, L)
    dot = jnp.einsum('bld,bdm->blm', w_q, w_k) * 30.0
    aff = jax.nn.softmax(dot, axis=-1)
    w_v = jnp.transpose(src, (1, 0, 2))                              # (B, L, D)
    out = jnp.einsum('blm,bmd->bld', aff, w_v)
    src2 = jnp.transpose(out, (1, 0, 2))                             # (L, B, D)
    s = src + src2
    s5 = s.reshape(num_imgs, h, w, batch, dim).transpose(0, 3, 4, 1, 2)
    s5 = s5.reshape(-1, dim, h, w)
    ss = jnp.sum(s5 * s5, axis=(1, 2, 3), keepdims=True)
    norm_scale = math.sqrt(1.0 / (dim * 4 * 4))
    s5 = s5 * (norm_scale * jnp.sqrt((dim * h * w) / (ss + 1e-5)))
    s = s5.reshape(num_imgs, batch, dim, h * w).transpose(0, 3, 1, 2)
    return s.reshape(-1, batch, dim)


if __name__ == "__main__":
    # TODO(synk): FFN and RelationUnit.WV exist in __init__ but are unused in forward; not implemented.
    def _run_case(num_imgs, batch, d_model, h, w, dk, use_bias):
        L = num_imgs * h * w
        input_shape = (num_imgs, batch, d_model, h, w)
        key = jax.random.PRNGKey(0)
        k_src, k_w, k_b = jax.random.split(key, 3)
        src = jax.random.normal(k_src, (L, batch, d_model), dtype=jnp.float32)
        # Deterministic init mirroring RelationUnit's WK: normal(0, sqrt(2/out_features)).
        wk_weight = jax.random.normal(k_w, (dk, d_model), dtype=jnp.float32) * math.sqrt(2.0 / dk)
        if use_bias:
            wk_bias = 0.1 * jax.random.normal(k_b, (dk,), dtype=jnp.float32)
        else:
            wk_bias = jnp.zeros((dk,), dtype=jnp.float32)

        out = jax.block_until_ready(
            transformer_encoder_layer(src, wk_weight, wk_bias, input_shape))
        ref = _reference(src, wk_weight, wk_bias, input_shape)
        assert out.shape == (L, batch, d_model)
        # bf16 MXU matmuls -> slightly looser tolerance than pure f32.
        assert jnp.allclose(out, ref, rtol=2e-2, atol=2e-3), "mismatch vs pure-JAX reference"

    # Small, module-consistent shapes.
    _run_case(num_imgs=2, batch=2, d_model=32, h=4, w=4, dk=16, use_bias=False)
    # hw not a multiple of 8 (exercises the masked row padding used for TrDiMP's 18x18 maps).
    _run_case(num_imgs=3, batch=1, d_model=48, h=3, w=3, dk=8, use_bias=True)

    print("KERNEL_OK")
</pallas_src>

<mosaic_0001>
module attributes {stable_mosaic.version = 11 : i64} {
  func.func @_key_proj_kernel(%arg0: i32, %arg1: memref<64x128xbf16, #tpu.memory_space<vmem>>, %arg2: memref<128x128xbf16, #tpu.memory_space<vmem>>, %arg3: memref<1x128xf32, #tpu.memory_space<vmem>>, %arg4: memref<64x128xbf16, #tpu.memory_space<vmem>>) attributes {dimension_semantics = [#tpu.dimension_semantics<parallel>], iteration_bounds = array<i64: 1>, scalar_prefetch = 0 : i64, scratch_operands = 0 : i64, tpu.core_type = #tpu.core_type<tc>, window_params = [{transform_indices = @transform_0, window_bounds = array<i64: 64, 128>}, {pipeline_mode = #tpu.pipeline_mode<synchronous>, transform_indices = @transform_1, window_bounds = array<i64: 128, 128>}, {pipeline_mode = #tpu.pipeline_mode<synchronous>, transform_indices = @transform_2, window_bounds = array<i64: 1, 128>}, {transform_indices = @transform_3, window_bounds = array<i64: 64, 128>}]} {
    %c0 = arith.constant 0 : index
    %c0_0 = arith.constant 0 : index
    %0 = vector.load %arg1[%c0, %c0_0] : memref<64x128xbf16, #tpu.memory_space<vmem>>, vector<64x128xbf16>
    %c0_1 = arith.constant 0 : index
    %c0_2 = arith.constant 0 : index
    %1 = vector.load %arg2[%c0_1, %c0_2] : memref<128x128xbf16, #tpu.memory_space<vmem>>, vector<128x128xbf16>
    %cst = arith.constant dense<0.000000e+00> : vector<64x128xf32>
    %2 = tpu.matmul %0, %1, %cst {dimension_numbers = #tpu.dot_dimension_numbers<[1], [0], [0], [1], [0, 0, 1, 1], [], []>} : vector<64x128xbf16>, vector<128x128xbf16>, vector<64x128xf32> -> vector<64x128xf32>
    %c0_3 = arith.constant 0 : index
    %c0_4 = arith.constant 0 : index
    %3 = vector.load %arg3[%c0_3, %c0_4] : memref<1x128xf32, #tpu.memory_space<vmem>>, vector<1x128xf32>
    %4 = vector.broadcast %3 : vector<1x128xf32> to vector<64x128xf32>
    %5 = arith.addf %2, %4 : vector<64x128xf32>
    %6 = arith.mulf %5, %5 : vector<64x128xf32>
    %cst_5 = arith.constant dense<0.000000e+00> : vector<64xf32>
    %7 = vector.multi_reduction <add>, %6, %cst_5 [1] : vector<64x128xf32> to vector<64xf32>
    %8 = vector.shape_cast %7 : vector<64xf32> to vector<64x1xf32>
    %cst_6 = arith.constant 1.000000e-24 : f32
    %9 = vector.broadcast %cst_6 : f32 to vector<64x1xf32>
    %10 = arith.maximumf %8, %9 : vector<64x1xf32>
    %11 = math.rsqrt %10 : vector<64x1xf32>
    %12 = vector.broadcast %11 : vector<64x1xf32> to vector<64x128xf32>
    %13 = arith.mulf %5, %12 : vector<64x128xf32>
    %14 = arith.truncf %13 : vector<64x128xf32> to vector<64x128xbf16>
    %c0_7 = arith.constant 0 : index
    %c0_8 = arith.constant 0 : index
    %15 = vector.load %arg4[%c0_7, %c0_8] : memref<64x128xbf16, #tpu.memory_space<vmem>>, vector<64x128xbf16>
    tpu.vector_store %arg4[%c0_7, %c0_8], %14 {strides = array<i32>} : memref<64x128xbf16, #tpu.memory_space<vmem>>, vector<64x128xbf16>,
    return
  }
  func.func @transform_0(%arg0: i32) -> (i32, i32) {
    %c0_i32 = arith.constant 0 : i32
    %c0_i32_0 = arith.constant 0 : i32
    return %arg0, %c0_i32 : i32, i32
  }
  func.func @transform_1(%arg0: i32) -> (i32, i32) {
    %c0_i32 = arith.constant 0 : i32
    %c0_i32_0 = arith.constant 0 : i32
    %c0_i32_1 = arith.constant 0 : i32
    return %c0_i32, %c0_i32_0 : i32, i32
  }
  func.func @transform_2(%arg0: i32) -> (i32, i32) {
    %c0_i32 = arith.constant 0 : i32
    %c0_i32_0 = arith.constant 0 : i32
    %c0_i32_1 = arith.constant 0 : i32
    return %c0_i32, %c0_i32_0 : i32, i32
  }
  func.func @transform_3(%arg0: i32) -> (i32, i32) {
    %c0_i32 = arith.constant 0 : i32
    %c0_i32_0 = arith.constant 0 : i32
    return %arg0, %c0_i32 : i32, i32
  }
}

</mosaic_0001>

<bundles_post_ra>
// kernel: tpu_custom_call.1
= control target key start
LH: loop header
LB: loop body
LE: loop exit
PB: predicated region body
PF: predicated region fallthrough
CT: control target
= control target key end

     0   :  { %8 = vsyncpa [#allocation3], 0  ;;  %s684_s0 = inlined_call_operand.hbm [shape: bf16[64,128], index: 0, kind: input, shape index: {}]   ;;  %s685_s1 = inlined_call_operand.hbm [shape: bf16[128,128], index: 1, kind: input, shape index: {}]   ;;  %s686_s2 = inlined_call_operand.vmem [shape: f32[1,128], index: 2, kind: input, shape index: {}]   ;;  %s687_s3 = inlined_call_operand.hbm [shape: bf16[64,128], index: 3, kind: output, shape index: {}]  }
   0x1   :  { %9 = vsyncpa [#allocation6], 0 }
   0x2   :  { %10 = vsyncpa [#allocation4], 0  ;;  %s15_s14 = sshll.u32 %s684_s0, 4  ;;  %s539_s15 = smov [#allocation2]   ;;  %s16_s14 = int_to_ptr.hbm [resolvable:$true] %s15_s14 }
   0x3   :  { %s17_s16 = sshll.u32 %s539_s15, 4  ;;  %s28_s19 = sshll.u32 %s685_s1, 4  ;;  %s18_s16 = int_to_ptr.vmem [resolvable:$true] %s17_s16  ;;  %s29_s19 = int_to_ptr.hbm [resolvable:$true] %s28_s19 }
   0x4   :  { %s540_s20 = smov 64   ;;  %s541_s21 = smov 4  }
   0x5   :  { %23 = dma.hbm_to_vmem [thread:$0]  %s16_s14, 512, %s18_s16, [#allocation3], %s540_s20, %s540_s20, %s541_s21  }
   0x6   :  { %s542_s22 = smov [#allocation5]  }
   0x7   :  { %s30_s23 = sshll.u32 %s542_s22, 4  ;;  %s31_s23 = int_to_ptr.vmem [resolvable:$true] %s30_s23 }
   0x8   :  { %36 = dma.hbm_to_vmem [thread:$0]  %s29_s19, 1024, %s31_s23, [#allocation6], %s540_s20, %s540_s20, %s541_s21  }
   0x9   :  { %533 = dma.done.wait [#allocation3], 512  }
   0xa   :  { %534 = vsyncadd [#allocation3], 4294966784 }
   0xb   :  { %535 = dma.done.wait [#allocation6], 1024  }
   0xc   :  { %536 = vsyncadd [#allocation6], 4294966272  ;;  %v391_v0 = vld [vmem:[#allocation5 + $0x38] sm:$0xff]  ;;  %v390_v1 = vld [vmem:[#allocation5 + $0x30] sm:$0xff]  ;;  %s318_s27 = sshll.u32 %s687_s3, 4  ;;  %s319_s27 = int_to_ptr.hbm [resolvable:$true] %s318_s27 }
   0xd   :  { %147 = vmatpush.bf16.msra.mxu0 %v391_v0  ;;  %415 = vmatpush.bf16.msra.mxu1 %v391_v0  ;;  %v389_v2 = vld [vmem:[#allocation5 + $0x28] sm:$0xff]  ;;  %v388_v3 = vld [vmem:[#allocation5 + $0x20] sm:$0xff]  ;;  %v387_v4 = vld [vmem:[#allocation5 + $0x18] sm:$0xff] }
   0xe   :  { %416 = vmatpush.bf16.msra.mxu2 %v391_v0  ;;  %417 = vmatpush.bf16.msra.mxu3 %v391_v0  ;;  %v386_v5 = vld [vmem:[#allocation5 + $0x10] sm:$0xff]  ;;  %v385_v6 = vld [vmem:[#allocation5 + $0x8] sm:$0xff]  ;;  %v384_v7 = vld [vmem:[#allocation5] sm:$0xff] }
   0xf   :  { %v380_v8 = vld [vmem:[#allocation2] sm:$0xff]  ;;  %v381_v9 = vld [vmem:[#allocation2 + $0x8] sm:$0xff]  ;;  %v382_v10 = vld [vmem:[#allocation2 + $0x10] sm:$0xff] }
  0x10   :  { %v383_v11 = vld [vmem:[#allocation2 + $0x18] sm:$0xff]  ;;  %v444_v12 = vld [vmem:[%s686_s2] ss:$0 sm:$0xff]  ;;  %s543_s2 = smov [#allocation7]  }
  0x11   :  { %148 = vmatpush.bf16.msra.mxu0 %v390_v1  ;;  %418 = vmatpush.bf16.msra.mxu1 %v390_v1  ;;  %s316_s24 = sshll.u32 %s543_s2, 4  ;;  %s317_s24 = int_to_ptr.vmem [resolvable:$true] %s316_s24 }
  0x12   :  { %419 = vmatpush.bf16.msra.mxu2 %v390_v1  ;;  %420 = vmatpush.bf16.msra.mxu3 %v390_v1 }
  0x15   :  { %149 = vmatpush.bf16.msra.mxu0 %v389_v2  ;;  %421 = vmatpush.bf16.msra.mxu1 %v389_v2 }
  0x16   :  { %422 = vmatpush.bf16.msra.mxu2 %v389_v2  ;;  %423 = vmatpush.bf16.msra.mxu3 %v389_v2 }
  0x19   :  { %150 = vmatpush.bf16.msra.mxu0 %v388_v3  ;;  %424 = vmatpush.bf16.msra.mxu1 %v388_v3 }
  0x1a   :  { %425 = vmatpush.bf16.msra.mxu2 %v388_v3  ;;  %426 = vmatpush.bf16.msra.mxu3 %v388_v3 }
  0x1d   :  { %151 = vmatpush.bf16.msra.mxu0 %v387_v4  ;;  %427 = vmatpush.bf16.msra.mxu1 %v387_v4 }
  0x1e   :  { %428 = vmatpush.bf16.msra.mxu2 %v387_v4  ;;  %429 = vmatpush.bf16.msra.mxu3 %v387_v4 }
  0x21   :  { %152 = vmatpush.bf16.msra.mxu0 %v386_v5  ;;  %430 = vmatpush.bf16.msra.mxu1 %v386_v5 }
  0x22   :  { %431 = vmatpush.bf16.msra.mxu2 %v386_v5  ;;  %432 = vmatpush.bf16.msra.mxu3 %v386_v5 }
  0x25   :  { %153 = vmatpush.bf16.msra.mxu0 %v385_v6  ;;  %433 = vmatpush.bf16.msra.mxu1 %v385_v6 }
  0x26   :  { %434 = vmatpush.bf16.msra.mxu2 %v385_v6  ;;  %435 = vmatpush.bf16.msra.mxu3 %v385_v6 }
  0x29   :  { %154 = vmatpush.bf16.msra.mxu0 %v384_v7  ;;  %436 = vmatpush.bf16.msra.mxu1 %v384_v7 }
  0x2a   :  { %437 = vmatpush.bf16.msra.mxu2 %v384_v7  ;;  %438 = vmatpush.bf16.msra.mxu3 %v384_v7 }
  0x2c   :  { %155 = vmatmul.bf16.vlgmr.msra.gmra.mxu0 %v380_v8  ;;  %160 = vmatmul.bf16.vlgmr.msra.gmra.mxu1 %v381_v9 }
  0x2d   :  { %165 = vmatmul.bf16.vlgmr.msra.gmra.mxu2 %v382_v10  ;;  %170 = vmatmul.bf16.vlgmr.msra.gmra.mxu3 %v383_v11 }
  0xa9   :  { %v156_v13 = vpop.f32.mrf.mxu0  ;;  %v161_v14 = vpop.f32.mrf.mxu1 }
  0xaa   :  { %v579_v15 = vadd.f32 %v444_v12, %v156_v13  ;;  %v581_v16 = vadd.f32 %v444_v12, %v161_v14 }
  0xac   :  { %v178_v17 = vmul.f32 %v581_v16, %v581_v16  ;;  %v176_v18 = vmul.f32 %v579_v15, %v579_v15 }
  0xae   :  { %188 = vadd.xlane.f32.xlu1 %v178_v17  ;;  %184 = vadd.xlane.f32.xlu0 %v176_v18 }
  0xb0   :  { %v166_v19 = vpop.f32.mrf.mxu2  ;;  %v171_v20 = vpop.f32.mrf.mxu3 }
  0xb1   :  { %v587_v21 = vadd.f32 %v444_v12, %v166_v19  ;;  %v158_v22 = vpop.f32.mrf.mxu0  ;;  %v163_v23 = vpop.f32.mrf.mxu1  ;;  %v599_v29 = vadd.f32 %v444_v12, %v171_v20 }
  0xb2   :  { %v589_v24 = vadd.f32 %v444_v12, %v158_v22  ;;  %v591_v25 = vadd.f32 %v444_v12, %v163_v23 }
  0xb3   :  { %v180_v26 = vmul.f32 %v587_v21, %v587_v21  ;;  %v182_v36 = vmul.f32 %v599_v29, %v599_v29 }
  0xb4   :  { %v179_v27 = vmul.f32 %v591_v25, %v591_v25  ;;  %v177_v28 = vmul.f32 %v589_v24, %v589_v24 }
  0xb5   :  { %192 = vadd.xlane.f32.xlu2 %v180_v26 }
  0xb6   :  { %190 = vadd.xlane.f32.xlu1 %v179_v27  ;;  %186 = vadd.xlane.f32.xlu0 %v177_v28 }
  0xb8   :  { %v168_v30 = vpop.f32.mrf.mxu2  ;;  %v173_v31 = vpop.f32.mrf.mxu3 }
  0xb9   :  { %v601_v32 = vadd.f32 %v444_v12, %v168_v30  ;;  %v603_v33 = vadd.f32 %v444_v12, %v173_v31 }
  0xbb   :  { %v181_v34 = vmul.f32 %v601_v32, %v601_v32  ;;  %v183_v35 = vmul.f32 %v603_v33, %v603_v33 }
  0xbd   :  { %194 = vadd.xlane.f32.xlu2 %v181_v34 }
  0xbe   :  { %198 = vadd.xlane.f32.xlu1 %v183_v35  ;;  %196 = vadd.xlane.f32.xlu0 %v182_v36 }
 0x121   :  { %v189_v37 = vpop.xlane.xlu1 %188  ;;  %v185_v38 = vpop.xlane.xlu0 %184 }
 0x122   :  { %v202_v39 = vmax.f32 %v189_v37, 1e-24  ;;  %v200_v40 = vmax.f32 %v185_v38, 1e-24 }
 0x124   :  { %445 = vrsqrt.f32 %v202_v39  ;;  %vm234_vm1 = vweird.f32 %v202_v39  ;;  %vm214_vm2 = vweird.f32 %v200_v40 }
 0x125   :  { %447 = vrsqrt.f32 %v200_v40 }
 0x128   :  { %v193_v41 = vpop.xlane.xlu2 %192 }
 0x129   :  { %v611_v42 = vmax.f32 %v193_v41, 1e-24  ;;  %v191_v43 = vpop.xlane.xlu1 %190  ;;  %v187_v44 = vpop.xlane.xlu0 %186 }
 0x12a   :  { %v446_v45 = vpop.eup %445  ;;  %v203_v46 = vmax.f32 %v191_v43, 1e-24  ;;  %v613_v47 = vmax.f32 %v187_v44, 1e-24 }
 0x12b   :  { %v615_v48 = vpop.eup %447  ;;  %v229_v49 = vmul.f32 %v446_v45, %v202_v39  ;;  %449 = vrsqrt.f32 %v611_v42  ;;  %vm235_vm0 = vweird.f32 %v446_v45  ;;  %vm254_vm13 = vweird.f32 %v611_v42 }
 0x12c   :  { %v209_v50 = vmul.f32 %v615_v48, %v200_v40  ;;  %451 = vrsqrt.f32 %v203_v46  ;;  %vm215_vm3 = vweird.f32 %v615_v48  ;;  %vm637_vm4 = vmor %vm234_vm1, %vm235_vm0  ;;  %vm244_vm8 = vweird.f32 %v203_v46 }
 0x12d   :  { %v230_v51 = vmul.f32 %v446_v45, %v229_v49  ;;  %453 = vrsqrt.f32 %v613_v47  ;;  %vm645_vm7 = vmor %vm214_vm2, %vm215_vm3  ;;  %vm224_vm9 = vweird.f32 %v613_v47 }
 0x12e   :  { %v210_v52 = vmul.f32 %v615_v48, %v209_v50 }
 0x12f   :  { %v231_v53 = vmul.f32 0.5, %v230_v51 }
 0x130   :  { %v211_v54 = vmul.f32 0.5, %v210_v52  ;;  %v195_v55 = vpop.xlane.xlu2 %194 }
 0x131   :  { %v621_v56 = vpop.eup %449  ;;  %v623_v57 = vmax.f32 %v195_v55, 1e-24  ;;  %v199_v58 = vpop.xlane.xlu1 %198  ;;  %v232_v60 = vsub.f32 1.5, %v231_v53 }
 0x132   :  { %v452_v59 = vpop.eup %451  ;;  %v249_v61 = vmul.f32 %v621_v56, %v611_v42  ;;  %v627_v62 = vmax.f32 %v199_v58, 1e-24  ;;  %v212_v1 = vsub.f32 1.5, %v211_v54  ;;  %v197_v4 = vpop.xlane.xlu0 %196  ;;  %vm255_vm11 = vweird.f32 %v621_v56 }
 0x133   :  { %v454_v63 = vpop.eup %453  ;;  %v239_v0 = vmul.f32 %v452_v59, %v203_v46  ;;  %455 = vrsqrt.f32 %v623_v57  ;;  %v233_v6 = vmul.f32 %v446_v45, %v232_v60  ;;  %v633_v10 = vmax.f32 %v197_v4, 1e-24  ;;  %vm662_vm15 = vmor %vm254_vm13, %vm255_vm11 }
 0x134   :  { %v250_v2 = vmul.f32 %v621_v56, %v249_v61  ;;  %v219_v3 = vmul.f32 %v454_v63, %v613_v47  ;;  %457 = vrsqrt.f32 %v627_v62  ;;  %v213_v11 = vmul.f32 %v615_v48, %v212_v1 }
 0x135   :  { %v240_v5 = vmul.f32 %v452_v59, %v239_v0  ;;  %vm245_vm5 = vweird.f32 %v452_v59  ;;  %459 = vrsqrt.f32 %v633_v10  ;;  %v237_v19 = vsel %vm637_vm4, %v446_v45, %v233_v6 }
 0x136   :  { %v251_v7 = vmul.f32 0.5, %v250_v2  ;;  %v220_v8 = vmul.f32 %v454_v63, %v219_v3  ;;  %vm225_vm6 = vweird.f32 %v454_v63  ;;  %v217_v28 = vsel %vm645_vm7, %v615_v48, %v213_v11  ;;  %vm246_vm10 = vmor %vm244_vm8, %vm245_vm5 }
 0x137   :  { %v241_v9 = vmul.f32 0.5, %v240_v5  ;;  %v290_v35 = vmul.f32 %v237_v19, %v581_v16  ;;  %vm226_vm12 = vmor %vm224_vm9, %vm225_vm6  ;;  %v288_v44 = vmul.f32 %v217_v28, %v579_v15  ;;  %vm264_vm0 = vweird.f32 %v623_v57 }
 0x138   :  { %v221_v12 = vmul.f32 0.5, %v220_v8  ;;  %v252_v17 = vsub.f32 1.5, %v251_v7  ;;  %vm284_vm3 = vweird.f32 %v627_v62  ;;  %vm274_vm6 = vweird.f32 %v633_v10 }
 0x139   :  { %v456_v13 = vpop.eup %455  ;;  %v242_v18 = vsub.f32 1.5, %v241_v9 }
 0x13a   :  { %v222_v20 = vsub.f32 1.5, %v221_v12  ;;  %v259_v22 = vmul.f32 %v456_v13, %v623_v57  ;;  %v458_v23 = vpop.eup %457  ;;  %v253_v36 = vmul.f32 %v621_v56, %v252_v17  ;;  %vm265_vm14 = vweird.f32 %v456_v13 }
 0x13b   :  { %v243_v27 = vmul.f32 %v452_v59, %v242_v18  ;;  %v279_v34 = vmul.f32 %v458_v23, %v627_v62  ;;  %v460_v43 = vpop.eup %459  ;;  %vm285_vm1 = vweird.f32 %v458_v23  ;;  %vm266_vm2 = vmor %vm264_vm0, %vm265_vm14 }
 0x13c   :  { %v223_v30 = vmul.f32 %v454_v63, %v222_v20  ;;  %v260_v31 = vmul.f32 %v456_v13, %v259_v22  ;;  %v257_v49 = vsel %vm662_vm15, %v621_v56, %v253_v36  ;;  %vm286_vm4 = vmor %vm284_vm3, %vm285_vm1  ;;  %vm275_vm5 = vweird.f32 %v460_v43 }
 0x13d   :  { %v247_v37 = vsel %vm246_vm10, %v452_v59, %v243_v27  ;;  %v280_v41 = vmul.f32 %v458_v23, %v279_v34  ;;  %v292_v54 = vmul.f32 %v257_v49, %v587_v21  ;;  %vm276_vm7 = vmor %vm274_vm6, %vm275_vm5 }
 0x13e   :  { %v291_v38 = vmul.f32 %v247_v37, %v591_v25  ;;  %v227_v39 = vsel %vm226_vm12, %v454_v63, %v223_v30  ;;  %v261_v40 = vmul.f32 0.5, %v260_v31  ;;  %v269_v25 = vmul.f32 %v460_v43, %v633_v10 }
 0x13f   :  { %v289_v45 = vmul.f32 %v227_v39, %v589_v24  ;;  %v281_v48 = vmul.f32 0.5, %v280_v41 }
 0x140   :  { %v400_v46 = vpack.c.bf16 %v291_v38, %v290_v35  ;;  %v262_v47 = vsub.f32 1.5, %v261_v40  ;;  %v270_v42 = vmul.f32 %v460_v43, %v269_v25 }
 0x141   :  { %v395_v50 = vpack.c.bf16 %v289_v45, %v288_v44  ;;  %v282_v24 = vsub.f32 1.5, %v281_v48 }
 0x142   :  { %412 = vst [vmem:[#allocation7 + $0x8] sm:$0xff] %v400_v46   ;;  %v263_v15 = vmul.f32 %v456_v13, %v262_v47  ;;  %v271_v53 = vmul.f32 0.5, %v270_v42 }
 0x143   :  { %396 = vst [vmem:[#allocation7] sm:$0xff] %v395_v50   ;;  %v283_v52 = vmul.f32 %v458_v23, %v282_v24 }
 0x144   :  { %v267_v51 = vsel %vm266_vm2, %v456_v13, %v263_v15  ;;  %v272_v57 = vsub.f32 1.5, %v271_v53 }
 0x145   :  { %v293_v55 = vmul.f32 %v267_v51, %v601_v32  ;;  %v287_v56 = vsel %vm286_vm4, %v458_v23, %v283_v52 }
 0x146   :  { %v273_v59 = vmul.f32 %v460_v43, %v272_v57  ;;  %v295_v60 = vmul.f32 %v287_v56, %v603_v33 }
 0x147   :  { %v405_v58 = vpack.c.bf16 %v293_v55, %v292_v54 }
 0x148   :  { %v277_v61 = vsel %vm276_vm7, %v460_v43, %v273_v59 }
 0x149   :  { %413 = vst [vmem:[#allocation7 + $0x10] sm:$0xff] %v405_v58   ;;  %v294_v21 = vmul.f32 %v277_v61, %v599_v29 }
 0x14b   :  { %v410_v32 = vpack.c.bf16 %v295_v60, %v294_v21 }
 0x14d   :  { %414 = vst [vmem:[#allocation7 + $0x18] sm:$0xff] %v410_v32  }
 0x14e   :  { %324 = dma.vmem_to_hbm [thread:$0]  %s317_s24, 512, %s319_s27, [#allocation4], %s540_s20, %s540_s20, %s541_s21  }
 0x14f   :  { %537 = dma.done.wait [#allocation4], 512  }
 0x150   :  { %538 = vsyncadd [#allocation4], 4294966784 }
 0x151   :  { %329 = vsyncpa [#allocation3], 1 }
 0x152   :  { %330 = vsyncpa [#allocation6], 1 }
 0x153   :  { %331 = vsyncpa [#allocation4], 1 }

</bundles_post_ra>
